<compile_context>
chip_gen: v7x
topology: tpu7x:2x2x1
jax: 0.10.0
libtpu: 0.0.40
codegen_flags: <defaults>
</compile_context>

<pallas_src>
from functools import partial

import jax
import jax.numpy as jnp
from jax.experimental import pallas as pl
from jax.experimental.pallas import tpu as pltpu


# ---------------------------------------------------------------------------
# Gaussian kernel parameterization (matches GaussianLayerV2.get_gauss_kernel).
# ---------------------------------------------------------------------------
def _sigmas(sigma_params):
    sp = sigma_params.astype(jnp.float32)
    norm = jnp.sqrt(jnp.sum(sp ** 2))
    # NOTE: the torch module would produce NaN for an all-zero parameter
    # vector; we guard the 0/0 instead (deliberate, documented divergence).
    norm = jnp.maximum(norm, 1e-12)
    return 2.0 * (jax.nn.sigmoid(sp / norm) + 1e-5)            # (T,)


def compute_gauss_kernels_1d(sigma_params, k):
    """Normalized 1D taps g1n[t, i]; the module's normalized 2D kernel equals
    outer(g1n[t], g1n[t]) exactly (the pi*sigma factor cancels)."""
    ks = 2 * k + 1
    d2 = (jnp.arange(ks, dtype=jnp.float32) - k) ** 2          # (ks,)
    sig = _sigmas(sigma_params)                                 # (T,)
    g = jnp.exp(-d2[None, :] / sig[:, None])                    # (T, ks)
    return (g / jnp.sum(g, axis=1, keepdims=True)).astype(jnp.float32)


def compute_gauss_kernels_2d(sigma_params, k):
    """Full 2D kernels (used only by the independent reference)."""
    ks = 2 * k + 1
    ii = jnp.arange(ks, dtype=jnp.float32)
    mat = (ii[:, None] - k) ** 2 + (ii[None, :] - k) ** 2       # (ks, ks)
    sig = _sigmas(sigma_params)
    gk = jnp.exp(-mat[None] / sig[:, None, None]) / (jnp.pi * sig[:, None, None])
    return (gk / jnp.sum(gk, axis=(1, 2), keepdims=True)).astype(jnp.float32)


def _banded_corr(taps, n, k):
    """A[t, i, j] = taps[t, j - i + k] for |i - j| <= k, else 0.
    (A_t @ v)[i] = sum_j taps[t, j-i+k] * v[j]  ==  'same' cross-correlation of
    v with taps_t under zero padding -- exactly conv3d's H/W padding behavior."""
    idx = jnp.arange(n)
    diff = idx[None, :] - idx[:, None] + k                      # j - i + k
    valid = (diff >= 0) & (diff <= 2 * k)
    a = taps[:, jnp.clip(diff, 0, 2 * k)]                       # (T, n, n)
    return jnp.where(valid[None], a, 0.0).astype(jnp.float32)


# ---------------------------------------------------------------------------
# Pallas kernel: y_t = Ah_t @ x_plane @ Aw_t for db planes per grid step.
# ---------------------------------------------------------------------------
def _make_kernel(db: int):
    def kernel(ah_ref, aw_ref, x_ref, o_ref):
        # ah_ref: (H, H)      left  correlation matrix for template t
        # aw_ref: (W, W)      right correlation matrix (transposed) for t
        # x_ref : (db, H, W)  input planes for this (n, d-block)
        # o_ref : (db, H, W)  output block, mapped into (N, T, D, H, W)
        ah = ah_ref[...]
        aw = aw_ref[...]
        for d in range(db):                       # small static unroll; each
            xd = x_ref[d].astype(jnp.float32)     # iteration ends in a store,
            y = jnp.dot(xd, aw,                   # so live temporaries stay at
                        preferred_element_type=jnp.float32)   # one (H, W) plane
            y = jnp.dot(ah, y, preferred_element_type=jnp.float32)
            o_ref[d] = y.astype(o_ref.dtype)

    return kernel


@partial(jax.jit, static_argnames=("k",))
def gaussian_layer_v2(x, sigma_params, k=1):
    N, C, D, H, W = x.shape
    assert C == 1, "conv3d weights have in_channels=1"
    T = sigma_params.shape[0]

    # Parameter -> normalized 1D taps -> banded "same"-correlation matrices.
    g1 = compute_gauss_kernels_1d(sigma_params, k)              # (T, ks)
    ah = _banded_corr(g1, H, k)                                  # (T, H, H), left
    aw = jnp.swapaxes(_banded_corr(g1, W, k), 1, 2)              # (T, W, W), right

    x4 = x.reshape(N, D, H, W)                                   # free (C == 1)
    isz = x.dtype.itemsize

    # Planes per step: largest divisor of D that is <= 8 and keeps the
    # double-buffered in/out blocks + banded matrices well inside VMEM.
    bytes_fixed = 2 * 4 * (H * H + W * W)                        # Ah + Aw, x2 buf

    def _fits(db_):
        return bytes_fixed + 2 * 2 * db_ * H * W * isz <= 24 * (1 << 20)

    db = 1
    for cand in range(min(D, 8), 0, -1):
        if D % cand == 0 and _fits(cand):
            db = cand
            break

    grid = (N, D // db, T)                                       # 10 steps shipped

    # Generous, dtype-aware limit (>= defaults, <= v7x headroom); never binding
    # for the small blocks this kernel uses.
    vmem_needed = bytes_fixed + 2 * 2 * db * H * W * isz
    vmem_limit = int(min(max(vmem_needed + (4 << 20), 32 << 20), 48 << 20))

    out = pl.pallas_call(
        _make_kernel(db),
        out_shape=jax.ShapeDtypeStruct((N, T, D, H, W), x.dtype),
        grid=grid,
        in_specs=[
            pl.BlockSpec((None, H, H), lambda n, dblk, t: (t, 0, 0)),       # Ah_t
            pl.BlockSpec((None, W, W), lambda n, dblk, t: (t, 0, 0)),       # Aw_t
            pl.BlockSpec((None, db, H, W), lambda n, dblk, t: (n, dblk, 0, 0)),
        ],
        out_specs=pl.BlockSpec((None, None, db, H, W),
                               lambda n, dblk, t: (n, t, dblk, 0, 0)),
        compiler_params=pltpu.CompilerParams(
            dimension_semantics=("parallel", "parallel", "parallel"),
            vmem_limit_bytes=vmem_limit,
        ),
    )(ah, aw, x4)
    return out


# ---------------------------------------------------------------------------
# Independent reference (same math as torch conv3d with kD == 1).
# ---------------------------------------------------------------------------
def _reference(x, sigma_params, k):
    N, C, D, H, W = x.shape
    T = sigma_params.shape[0]
    gk = compute_gauss_kernels_2d(sigma_params, k)               # (T, ks, ks)
    rhs = gk[:, None, :, :]                                      # (T, 1, ks, ks)
    lhs = x.reshape(N * D, 1, H, W)
    out = jax.lax.conv_general_dilated(
        lhs, rhs, window_strides=(1, 1), padding=[(k, k), (k, k)],
        dimension_numbers=("NCHW", "OIHW", "NCHW"))
    return out.reshape(N, D, T, H, W).transpose(0, 2, 1, 3, 4)


if __name__ == "__main__":
    key = jax.random.PRNGKey(0)
    kx, ks_key = jax.random.split(key)

    k = 1                 # kernel_size
    template_num = 5
    N, C, D, H, W = 2, 1, 4, 16, 16

    x = jax.random.normal(kx, (N, C, D, H, W), dtype=jnp.float32)
    # sigma_parameters: module inits to ones -- perturb so templates differ.
    sigma_parameters = jnp.ones((template_num,), jnp.float32) \
        + 0.1 * jax.random.normal(ks_key, (template_num,), dtype=jnp.float32)

    out = gaussian_layer_v2(x, sigma_parameters, k=k)
    out = jax.block_until_ready(out)

    ref = _reference(x, sigma_parameters, k)
    assert out.shape == (N, template_num, D, H, W)
    assert jnp.allclose(out, ref, atol=1e-5, rtol=1e-5)

    print("KERNEL_OK")
</pallas_src>

<mosaic_0001>
module attributes {stable_mosaic.version = 11 : i64} {
  func.func @kernel(%arg0: i32, %arg1: i32, %arg2: i32, %arg3: memref<1x16x16xf32, #tpu.memory_space<vmem>>, %arg4: memref<1x16x16xf32, #tpu.memory_space<vmem>>, %arg5: memref<1x4x16x16xf32, #tpu.memory_space<vmem>>, %arg6: memref<1x1x4x16x16xf32, #tpu.memory_space<vmem>>) attributes {dimension_semantics = [#tpu.dimension_semantics<parallel>, #tpu.dimension_semantics<parallel>, #tpu.dimension_semantics<parallel>], iteration_bounds = array<i64: 2, 1, 5>, scalar_prefetch = 0 : i64, scratch_operands = 0 : i64, tpu.core_type = #tpu.core_type<tc>, window_params = [{transform_indices = @transform_0, window_bounds = array<i64: 1, 16, 16>}, {transform_indices = @transform_1, window_bounds = array<i64: 1, 16, 16>}, {transform_indices = @transform_2, window_bounds = array<i64: 1, 4, 16, 16>}, {transform_indices = @transform_3, window_bounds = array<i64: 1, 1, 4, 16, 16>}]} {
    %c0 = arith.constant 0 : index
    %c0_0 = arith.constant 0 : index
    %c0_1 = arith.constant 0 : index
    %0 = vector.load %arg3[%c0, %c0_0, %c0_1] : memref<1x16x16xf32, #tpu.memory_space<vmem>>, vector<1x16x16xf32>
    %1 = vector.shape_cast %0 : vector<1x16x16xf32> to vector<16x16xf32>
    %c0_2 = arith.constant 0 : index
    %c0_3 = arith.constant 0 : index
    %c0_4 = arith.constant 0 : index
    %2 = vector.load %arg4[%c0_2, %c0_3, %c0_4] : memref<1x16x16xf32, #tpu.memory_space<vmem>>, vector<1x16x16xf32>
    %3 = vector.shape_cast %2 : vector<1x16x16xf32> to vector<16x16xf32>
    %c0_5 = arith.constant 0 : index
    %c0_6 = arith.constant 0 : index
    %c0_7 = arith.constant 0 : index
    %c0_8 = arith.constant 0 : index
    %4 = vector.load %arg5[%c0_5, %c0_6, %c0_7, %c0_8] : memref<1x4x16x16xf32, #tpu.memory_space<vmem>>, vector<1x1x16x16xf32>
    %5 = vector.shape_cast %4 : vector<1x1x16x16xf32> to vector<16x16xf32>
    %cst = arith.constant dense<0.000000e+00> : vector<16x16xf32>
    %6 = tpu.matmul %5, %3, %cst {dimension_numbers = #tpu.dot_dimension_numbers<[1], [0], [0], [1], [0, 0, 1, 1], [], []>} : vector<16x16xf32>, vector<16x16xf32>, vector<16x16xf32> -> vector<16x16xf32>
    %cst_9 = arith.constant dense<0.000000e+00> : vector<16x16xf32>
    %7 = tpu.matmul %1, %6, %cst_9 {dimension_numbers = #tpu.dot_dimension_numbers<[1], [0], [0], [1], [0, 0, 1, 1], [], []>} : vector<16x16xf32>, vector<16x16xf32>, vector<16x16xf32> -> vector<16x16xf32>
    %c0_10 = arith.constant 0 : index
    %c0_11 = arith.constant 0 : index
    %c0_12 = arith.constant 0 : index
    %c0_13 = arith.constant 0 : index
    %c0_14 = arith.constant 0 : index
    %8 = vector.load %arg6[%c0_10, %c0_11, %c0_12, %c0_13, %c0_14] : memref<1x1x4x16x16xf32, #tpu.memory_space<vmem>>, vector<1x1x1x16x16xf32>
    %9 = vector.shape_cast %8 : vector<1x1x1x16x16xf32> to vector<16x16xf32>
    %10 = vector.shape_cast %7 : vector<16x16xf32> to vector<1x1x1x16x16xf32>
    tpu.vector_store %arg6[%c0_10, %c0_11, %c0_12, %c0_13, %c0_14], %10 {strides = array<i32>} : memref<1x1x4x16x16xf32, #tpu.memory_space<vmem>>, vector<1x1x1x16x16xf32>,
    %c0_15 = arith.constant 0 : index
    %c1 = arith.constant 1 : index
    %c0_16 = arith.constant 0 : index
    %c0_17 = arith.constant 0 : index
    %11 = vector.load %arg5[%c0_15, %c1, %c0_16, %c0_17] : memref<1x4x16x16xf32, #tpu.memory_space<vmem>>, vector<1x1x16x16xf32>
    %12 = vector.shape_cast %11 : vector<1x1x16x16xf32> to vector<16x16xf32>
    %cst_18 = arith.constant dense<0.000000e+00> : vector<16x16xf32>
    %13 = tpu.matmul %12, %3, %cst_18 {dimension_numbers = #tpu.dot_dimension_numbers<[1], [0], [0], [1], [0, 0, 1, 1], [], []>} : vector<16x16xf32>, vector<16x16xf32>, vector<16x16xf32> -> vector<16x16xf32>
    %cst_19 = arith.constant dense<0.000000e+00> : vector<16x16xf32>
    %14 = tpu.matmul %1, %13, %cst_19 {dimension_numbers = #tpu.dot_dimension_numbers<[1], [0], [0], [1], [0, 0, 1, 1], [], []>} : vector<16x16xf32>, vector<16x16xf32>, vector<16x16xf32> -> vector<16x16xf32>
    %c0_20 = arith.constant 0 : index
    %c0_21 = arith.constant 0 : index
    %c1_22 = arith.constant 1 : index
    %c0_23 = arith.constant 0 : index
    %c0_24 = arith.constant 0 : index
    %15 = vector.load %arg6[%c0_20, %c0_21, %c1_22, %c0_23, %c0_24] : memref<1x1x4x16x16xf32, #tpu.memory_space<vmem>>, vector<1x1x1x16x16xf32>
    %16 = vector.shape_cast %15 : vector<1x1x1x16x16xf32> to vector<16x16xf32>
    %17 = vector.shape_cast %14 : vector<16x16xf32> to vector<1x1x1x16x16xf32>
    tpu.vector_store %arg6[%c0_20, %c0_21, %c1_22, %c0_23, %c0_24], %17 {strides = array<i32>} : memref<1x1x4x16x16xf32, #tpu.memory_space<vmem>>, vector<1x1x1x16x16xf32>,
    %c0_25 = arith.constant 0 : index
    %c2 = arith.constant 2 : index
    %c0_26 = arith.constant 0 : index
    %c0_27 = arith.constant 0 : index
    %18 = vector.load %arg5[%c0_25, %c2, %c0_26, %c0_27] : memref<1x4x16x16xf32, #tpu.memory_space<vmem>>, vector<1x1x16x16xf32>
    %19 = vector.shape_cast %18 : vector<1x1x16x16xf32> to vector<16x16xf32>
    %cst_28 = arith.constant dense<0.000000e+00> : vector<16x16xf32>
    %20 = tpu.matmul %19, %3, %cst_28 {dimension_numbers = #tpu.dot_dimension_numbers<[1], [0], [0], [1], [0, 0, 1, 1], [], []>} : vector<16x16xf32>, vector<16x16xf32>, vector<16x16xf32> -> vector<16x16xf32>
    %cst_29 = arith.constant dense<0.000000e+00> : vector<16x16xf32>
    %21 = tpu.matmul %1, %20, %cst_29 {dimension_numbers = #tpu.dot_dimension_numbers<[1], [0], [0], [1], [0, 0, 1, 1], [], []>} : vector<16x16xf32>, vector<16x16xf32>, vector<16x16xf32> -> vector<16x16xf32>
    %c0_30 = arith.constant 0 : index
    %c0_31 = arith.constant 0 : index
    %c2_32 = arith.constant 2 : index
    %c0_33 = arith.constant 0 : index
    %c0_34 = arith.constant 0 : index
    %22 = vector.load %arg6[%c0_30, %c0_31, %c2_32, %c0_33, %c0_34] : memref<1x1x4x16x16xf32, #tpu.memory_space<vmem>>, vector<1x1x1x16x16xf32>
    %23 = vector.shape_cast %22 : vector<1x1x1x16x16xf32> to vector<16x16xf32>
    %24 = vector.shape_cast %21 : vector<16x16xf32> to vector<1x1x1x16x16xf32>
    tpu.vector_store %arg6[%c0_30, %c0_31, %c2_32, %c0_33, %c0_34], %24 {strides = array<i32>} : memref<1x1x4x16x16xf32, #tpu.memory_space<vmem>>, vector<1x1x1x16x16xf32>,
    %c0_35 = arith.constant 0 : index
    %c3 = arith.constant 3 : index
    %c0_36 = arith.constant 0 : index
    %c0_37 = arith.constant 0 : index
    %25 = vector.load %arg5[%c0_35, %c3, %c0_36, %c0_37] : memref<1x4x16x16xf32, #tpu.memory_space<vmem>>, vector<1x1x16x16xf32>
    %26 = vector.shape_cast %25 : vector<1x1x16x16xf32> to vector<16x16xf32>
    %cst_38 = arith.constant dense<0.000000e+00> : vector<16x16xf32>
    %27 = tpu.matmul %26, %3, %cst_38 {dimension_numbers = #tpu.dot_dimension_numbers<[1], [0], [0], [1], [0, 0, 1, 1], [], []>} : vector<16x16xf32>, vector<16x16xf32>, vector<16x16xf32> -> vector<16x16xf32>
    %cst_39 = arith.constant dense<0.000000e+00> : vector<16x16xf32>
    %28 = tpu.matmul %1, %27, %cst_39 {dimension_numbers = #tpu.dot_dimension_numbers<[1], [0], [0], [1], [0, 0, 1, 1], [], []>} : vector<16x16xf32>, vector<16x16xf32>, vector<16x16xf32> -> vector<16x16xf32>
    %c0_40 = arith.constant 0 : index
    %c0_41 = arith.constant 0 : index
    %c3_42 = arith.constant 3 : index
    %c0_43 = arith.constant 0 : index
    %c0_44 = arith.constant 0 : index
    %29 = vector.load %arg6[%c0_40, %c0_41, %c3_42, %c0_43, %c0_44] : memref<1x1x4x16x16xf32, #tpu.memory_space<vmem>>, vector<1x1x1x16x16xf32>
    %30 = vector.shape_cast %29 : vector<1x1x1x16x16xf32> to vector<16x16xf32>
    %31 = vector.shape_cast %28 : vector<16x16xf32> to vector<1x1x1x16x16xf32>
    tpu.vector_store %arg6[%c0_40, %c0_41, %c3_42, %c0_43, %c0_44], %31 {strides = array<i32>} : memref<1x1x4x16x16xf32, #tpu.memory_space<vmem>>, vector<1x1x1x16x16xf32>,
    return
  }
  func.func @transform_0(%arg0: i32, %arg1: i32, %arg2: i32) -> (i32, i32, i32) {
    %c0_i32 = arith.constant 0 : i32
    %c0_i32_0 = arith.constant 0 : i32
    %c0_i32_1 = arith.constant 0 : i32
    return %arg2, %c0_i32, %c0_i32_0 : i32, i32, i32
  }
  func.func @transform_1(%arg0: i32, %arg1: i32, %arg2: i32) -> (i32, i32, i32) {
    %c0_i32 = arith.constant 0 : i32
    %c0_i32_0 = arith.constant 0 : i32
    %c0_i32_1 = arith.constant 0 : i32
    return %arg2, %c0_i32, %c0_i32_0 : i32, i32, i32
  }
  func.func @transform_2(%arg0: i32, %arg1: i32, %arg2: i32) -> (i32, i32, i32, i32) {
    %c0_i32 = arith.constant 0 : i32
    %c0_i32_0 = arith.constant 0 : i32
    %c0_i32_1 = arith.constant 0 : i32
    return %arg0, %arg1, %c0_i32, %c0_i32_0 : i32, i32, i32, i32
  }
  func.func @transform_3(%arg0: i32, %arg1: i32, %arg2: i32) -> (i32, i32, i32, i32, i32) {
    %c0_i32 = arith.constant 0 : i32
    %c0_i32_0 = arith.constant 0 : i32
    %c0_i32_1 = arith.constant 0 : i32
    return %arg0, %arg2, %arg1, %c0_i32, %c0_i32_0 : i32, i32, i32, i32, i32
  }
}

</mosaic_0001>

<bundles_post_ra>
// kernel: gaussian_layer_v2.1
= control target key start
LH: loop header
LB: loop body
LE: loop exit
PB: predicated region body
PF: predicated region fallthrough
CT: control target
= control target key end

     0   :  { %8 = vsyncpa [#allocation3], 0  ;;  %s1580_s0 = inlined_call_operand.vmem [shape: f32[5,16,16], index: 0, kind: input, shape index: {}]   ;;  %s1581_s1 = inlined_call_operand.vmem [shape: f32[5,16,16], index: 1, kind: input, shape index: {}]   ;;  %s1582_s2 = inlined_call_operand.vmem [shape: f32[2,4,16,16], index: 2, kind: input, shape index: {}]   ;;  %s1583_s3 = inlined_call_operand.hbm [shape: f32[2,5,4,16,16], index: 3, kind: output, shape index: {}]  }
   0x1   :  { %10 = vsyncpa [#allocation3 + $0x1], 0  ;;  %s1403_s12 = smov 0   ;;  %s1405_s13 = smov 0  }
   0x2   :  { %s1407_s14 = smov 0   ;;  %s1409_s15 = smov 0  }
   0x3   :  { %s1411_s16 = smov 0   ;;  %s1413_s17 = smov 0  }
   0x4   :  { %s1415_s18 = smov 0   ;;  %s1417_s19 = smov 0  }
   0x5 LB: > { %s1042_s20 = sadd.s32 4294967295, %s1378_s19   ;;  %s1043_s21 = sadd.s32 4294967294, %s1378_s19   ;;  %s1378_s19 = sphi %s1417_s19, %s16_s19   ;;  %s1374_s18 = sphi %s1415_s18, %s1592_s18   ;;  %s1370_s17 = sphi %s1413_s17, %s1591_s17   ;;  %s1366_s16 = sphi %s1411_s16, %s1590_s16   ;;  %s1362_s15 = sphi %s1409_s15, %s1589_s15   ;;  %s1358_s14 = sphi %s1407_s14, %s1588_s14   ;;  %s1354_s13 = sphi %s1405_s13, %s1587_s13   ;;  %s1350_s12 = sphi %s1403_s12, %s1586_s12  }
   0x6   : > { %s28_s22 = sadd.s32 1, %s1370_s17  ;;  %s35_s23 = sadd.s32 1, %s1374_s18 }
   0x7   : > { %p29_p0 = scmp.ge.s32.totalorder %s28_s22, 5  ;;  %p136_p1 = scmp.ne.s32.totalorder %s1358_s14, %s1354_s13 }
   0x8   : > { %p137_p2 = scmp.eq.s32.totalorder %s1042_s20, 9  ;;  %p142_p5 = scmp.ne.s32.totalorder %s1354_s13, %s1350_s12 }
   0x9   : > { %s1594_s22 = smov (%p29_p0, %s28_s22), 0  ;;  %s1596_s23 = smov (!%p29_p0, %s35_s23), %s1374_s18 }
   0xa   : > { %s120_s24 = ssub.s32 %s1370_s17, %s1594_s22  ;;  %p1454_p3 = por %p137_p2, %p136_p1 }
   0xb   : > { %p37_p4 = scmp.ge.s32.totalorder %s1596_s23, 2  ;;  %p143_p6 = scmp.eq.s32.totalorder %s1043_s21, 9 }
   0xc   : > { %p1046_p7 = scmp.ge.s32.totalorder %s1378_s19, 1  ;;  %p191_p9 = scmp.lt.s32.totalorder %s1378_s19, 11 }
   0xd   : > { %s1598_s23 = smov (%p37_p4, %s1596_s23), 0  ;;  %p1463_p8 = por %p143_p6, %p142_p5 }
   0xe   : > { %s119_s27 = ssub.s32 %s1374_s18, %s1598_s23  ;;  %s126_s28 = sadd.s32 1, %s1358_s14 }
   0xf   : > { %s121_s29 = sor.u32 %s120_s24, %s119_s27  ;;  %p192_p10 = pnand %p1046_p7, %p191_p9 }
  0x10   : > { %p124_p11 = scmp.eq.s32.totalorder %s121_s29, 0  ;;  %p230_p12 = scmp.lt.s32.totalorder (!%p192_p10), %s1362_s15, 4  ;;  %vm258_vm0 = vcmask (!%p192_p10), 130048  }
  0x11   : > { %195 = sbr.rel (%p192_p10) target bundleno = 494 (0x1ee), region = 32  ;;  %p241_p13 = scmp.lt.s32.totalorder (!%p192_p10), %s1366_s16, 1 }
  0x12   : > { %s1472_s30 = scalar_select %p124_p11, %s1358_s14, %s126_s28  }
  0x13   : > { %s227_s29 = sand.u32 (!%p192_p10), 1, %s1354_s13   ;;  %s1083_s7 = sshll.u32 (!%p192_p10), %s1362_s15, 3 }
  0x14   : > { %s1528_s20 = scalar_lea.sflag (!%p192_p10), [#allocation3], %s227_s29  ;;  %s1380_s24 = smov (!%p192_p10), [#allocation2]  }
  0x15   : > { %s1288_s27 = sshll.u32 (!%p192_p10), %s1380_s24, 4  ;;  %s1289_s27 = int_to_ptr.vmem [resolvable:$false] %s1288_s27 }
  0x18   : > { %s1477_s4 = scalar_select %p230_p12, %s1362_s15, 4 }
  0x19   : > { %s242_s5 = scalar_select %p241_p13, %s1366_s16, 1 }
  0x1a   : > { %s1087_s6 = sshll.u32 %s1477_s4, 4  ;;  %s1047_s4 = sshll.u32 %s227_s29, 6 }
  0x1b   : > { %s239_s9 = scalar_lea.vmem %s1581_s1, %s1087_s6  ;;  %s1089_s10 = sshll.u32 %s242_s5, 6 }
  0x1c   : > { %v254_v0 = vld [vmem:[%s239_s9] sm:$0xff]  ;;  %v255_v1 = vld [vmem:[%s239_s9 + $0x8] sm:$0xff]  ;;  %s249_s21 = scalar_lea.vmem %s1582_s2, %s1089_s10  ;;  %s234_s28 = scalar_lea.vmem %s1580_s0, %s1087_s6 }
  0x1d   : > { %v1178_v2 = vpack.c.bf16 %v255_v1, %v254_v0  ;;  %v256_v3 = vld [vmem:[%s249_s21] sm:$0xff]  ;;  %v257_v4 = vld [vmem:[%s249_s21 + $0x8] sm:$0xff]  ;;  %v1058_v5 = vld [vmem:[%s249_s21 + $0x10] sm:$0xff]  ;;  %s229_s5 = scalar_lea.vmem [#allocation2], %s1047_s4  ;;  %s1210_s6 = smul.u32 40, %s1366_s16 }
  0x1e   : > { %1126 = vmatprep.mubr.msk.f32.mxu0 %vm258_vm0, %v256_v3  ;;  %v1059_v6 = vld [vmem:[%s249_s21 + $0x18] sm:$0xff]  ;;  %v1066_v7 = vld [vmem:[%s249_s21 + $0x20] sm:$0xff]  ;;  %v1067_v8 = vld [vmem:[%s249_s21 + $0x28] sm:$0xff]  ;;  %s928_s10 = sshll.u32 %s229_s5, 4  ;;  %s1524_s10 = int_to_ptr.vmem [resolvable:$true] %s928_s10 }
  0x1f   : > { %1179 = vmatprep.subr.bf16.mxu0 %v1178_v2  ;;  %v1074_v9 = vld [vmem:[%s249_s21 + $0x30] sm:$0xff]  ;;  %v1075_v10 = vld [vmem:[%s249_s21 + $0x38] sm:$0xff]  ;;  %v252_v11 = vld [vmem:[%s234_s28] sm:$0xff]  ;;  %s925_s8 = sadd.s32 %s1210_s6, %s1083_s7  ;;  %s1284_s21 = scalar_lea.vmem %s1524_s10, 1024 }
  0x20   : > { %1181 = vmatpush3.bf16.msra.mxu0 %v1178_v2  ;;  %1133 = vmatprep.mubr.msk.f32.mxu1 %vm258_vm0, %v252_v11  ;;  %v253_v17 = vld [vmem:[%s234_s28 + $0x8] sm:$0xff]  ;;  %s1084_s9 = sshll.u32 %s925_s8, 7  ;;  %p1285_p0 = scmp.ne.s32.totalorder %s1524_s10, %s1284_s21 }
  0x21   : > { %1187 = vmatprep.subr.bf16.mxu0 %v1178_v2  ;;  %s1522_s15 = scalar_lea.hbm %s1583_s3, %s1084_s9  ;;  %s1290_s28 = scalar_lea.vmem %s1289_s27, 2048 }
  0x22   : > { %p1286_p1 = pnand %p1285_p0, %p1454_p3  ;;  %p1291_p4 = scmp.lt.s32.totalorder %s1524_s10, %s1289_s27 }
  0x23   : > { %1127 = vmatmul.mubr.msk.f32.vlgmr.msra.gmra.mrb[0].mxu0 %vm258_vm0, %v257_v4  ;;  %p1292_p5 = scmp.lt.s32.totalorder %s1290_s28, %s1284_s21 }
  0x24   : > { %1189 = vmatpush3.bf16.msra.mxu0 %v1178_v2  ;;  %1140 = vmatprep.mubr.msk.f32.mxu0 %vm258_vm0, %v1058_v5  ;;  %p1287_p2 = pneg %p1286_p1 }
  0x25   : > { %1195 = vmatprep.subr.bf16.mxu0 %v1178_v2  ;;  %p1293_p6 = por %p1292_p5, %p1291_p4 }
  0x27   : > { %1141 = vmatmul.mubr.msk.f32.vlgmr.msra.gmra.mrb[2].mxu0 %vm258_vm0, %v1059_v6  ;;  %p1294_p7 = pnand %p1293_p6, %p1287_p2 }
  0x28   : > { %1197 = vmatpush3.bf16.msra.mxu0 %v1178_v2  ;;  %1154 = vmatprep.mubr.msk.f32.mxu0 %vm258_vm0, %v1066_v7 }
  0x29   : > { %1203 = vmatprep.subr.bf16.mxu0 %v1178_v2 }
  0x2b   : > { %1155 = vmatmul.mubr.msk.f32.vlgmr.msra.gmra.mrb[4].mxu0 %vm258_vm0, %v1067_v8 }
  0x2c   : > { %1205 = vmatpush3.bf16.msra.mxu0 %v1178_v2  ;;  %1168 = vmatprep.mubr.msk.f32.mxu0 %vm258_vm0, %v1074_v9 }
  0x2f   : > { %1169 = vmatmul.mubr.msk.f32.vlgmr.msra.gmra.mrb[6].mxu0 %vm258_vm0, %v1075_v10 }
  0xf6   : > { %v1128_v12 = vpop.f32.mrb[0].mxu0 }
  0xf7   : > { %v331_v13 = vpop.f32.mrb[1].mxu0 }
  0xf8   : > { %v1182_v14 = vpack.c.bf16 %v1128_v12, %v331_v13 }
  0xfa   : > { %1183 = vmatprep.subr.bf16.mxu1 %v1182_v14  ;;  %v1142_v15 = vpop.f32.mrb[2].mxu0 }
  0xfb   : > { %1185 = vmatpush3.bf16.msra.mxu1 %v1182_v14  ;;  %v498_v16 = vpop.f32.mrb[3].mxu0 }
  0xfc   : > { %v1190_v18 = vpack.c.bf16 %v1142_v15, %v498_v16 }
  0xfe   : > { %1134 = vmatmul.mubr.msk.f32.vlgmr.msra.gmra.mrb[0].mxu1 %vm258_vm0, %v253_v17  ;;  %1191 = vmatprep.subr.bf16.mxu1 %v1190_v18  ;;  %v1156_v19 = vpop.f32.mrb[4].mxu0 }
  0xff   : > { %1193 = vmatpush3.bf16.msra.mxu1 %v1190_v18  ;;  %v660_v20 = vpop.f32.mrb[5].mxu0  ;;  %1147 = vmatprep.mubr.msk.f32.mxu1 %vm258_vm0, %v252_v11 }
 0x100   : > { %v1198_v21 = vpack.c.bf16 %v1156_v19, %v660_v20 }
 0x102   : > { %1148 = vmatmul.mubr.msk.f32.vlgmr.msra.gmra.mrb[2].mxu1 %vm258_vm0, %v253_v17  ;;  %1199 = vmatprep.subr.bf16.mxu1 %v1198_v21  ;;  %v1170_v22 = vpop.f32.mrb[6].mxu0 }
 0x103   : > { %1201 = vmatpush3.bf16.msra.mxu1 %v1198_v21  ;;  %v822_v23 = vpop.f32.mrb[7].mxu0  ;;  %1161 = vmatprep.mubr.msk.f32.mxu1 %vm258_vm0, %v252_v11 }
 0x104   : > { %v1206_v24 = vpack.c.bf16 %v1170_v22, %v822_v23 }
 0x106   : > { %1162 = vmatmul.mubr.msk.f32.vlgmr.msra.gmra.mrb[4].mxu1 %vm258_vm0, %v253_v17  ;;  %1207 = vmatprep.subr.bf16.mxu1 %v1206_v24 }
 0x107   : > { %1209 = vmatpush3.bf16.msra.mxu1 %v1206_v24  ;;  %1175 = vmatprep.mubr.msk.f32.mxu1 %vm258_vm0, %v252_v11 }
 0x10a   : > { %1176 = vmatmul.mubr.msk.f32.vlgmr.msra.gmra.mrb[6].mxu1 %vm258_vm0, %v253_v17 }
 0x1d1   : > { %v1135_v25 = vpop.f32.mrb[0].mxu1 }
 0x1d2   : > { %422 = vst.msk [vmem:[%s229_s5 + $0x8] sm:$0xff] %vm258_vm0, %v1135_v25  ;;  %v412_v26 = vpop.f32.mrb[1].mxu1 }
 0x1d3   : > { %421 = vst.msk [vmem:[%s229_s5] sm:$0xff] %vm258_vm0, %v412_v26 }
 0x1d5   : > { %v1149_v27 = vpop.f32.mrb[2].mxu1 }
 0x1d6   : > { %1065 = vst.msk [vmem:[%s229_s5 + $0x18] sm:$0xff] %vm258_vm0, %v1149_v27  ;;  %v573_v28 = vpop.f32.mrb[3].mxu1 }
 0x1d7   : > { %1064 = vst.msk [vmem:[%s229_s5 + $0x10] sm:$0xff] %vm258_vm0, %v573_v28 }
 0x1d9   : > { %v1163_v29 = vpop.f32.mrb[4].mxu1 }
 0x1da   : > { %1073 = vst.msk [vmem:[%s229_s5 + $0x28] sm:$0xff] %vm258_vm0, %v1163_v29  ;;  %v735_v30 = vpop.f32.mrb[5].mxu1 }
 0x1db   : > { %1072 = vst.msk [vmem:[%s229_s5 + $0x20] sm:$0xff] %vm258_vm0, %v735_v30 }
 0x1dd   : > { %v1177_v31 = vpop.f32.mrb[6].mxu1 }
 0x1de   : > { %1081 = vst.msk [vmem:[%s229_s5 + $0x38] sm:$0xff] %vm258_vm0, %v1177_v31  ;;  %v897_v32 = vpop.f32.mrb[7].mxu1 }
 0x1df   : > { %1080 = vst.msk [vmem:[%s229_s5 + $0x30] sm:$0xff] %vm258_vm0, %v897_v32 }
 0x1e0   : > { %1297 = shalt.err (!%p1294_p7)
}
 0x1e1   : > { %s1298_s29 = scalar_lea.hbm %s1522_s15, 1024  ;;  %s1302_s6 = scalar_lea.hbm %s1583_s3, 10240 }
 0x1e2   : > { %p1299_p9 = scmp.ne.s32.totalorder %s1522_s15, %s1298_s29  ;;  %p1303_p12 = scmp.lt.u32.totalorder %s1522_s15, %s1583_s3 }
 0x1e3   : > { %p1304_p13 = scmp.lt.u32.totalorder %s1302_s6, %s1298_s29  ;;  %p1306_p1 = scmp.lt.u32.totalorder %s1298_s29, %s1522_s15 }
 0x1e4   : > { %p1300_p10 = pnand %p1299_p9, %p1454_p3 }
 0x1e5   : > { %p1305_p0 = por %p1304_p13, %p1303_p12 }
 0x1e6   : > { %p1301_p11 = pneg %p1300_p10 }
 0x1e7   : > { %p1307_p2 = por %p1306_p1, %p1305_p0 }
 0x1e9   : > { %p1308_p4 = pnand %p1307_p2, %p1301_p11 }
 0x1eb   : > { %1311 = shalt.err (!%p1308_p4)
}
 0x1ec   : > { %s1381_s9 = smov 128   ;;  %s1382_s16 = smov 8  }
 0x1ed   : > { %1211 = dma.vmem_to_hbm [thread:$0]  (%p1454_p3), %s1524_s10, 1024, %s1522_s15, %s1528_s20, %s1381_s9, %s1381_s9, %s1382_s16  }
 0x1ee PF: > { %p1217_p5 = scmp.ge.s32.totalorder %s1378_s19, 2  ;;  %s943_s11 = sand.u32 1, %s1350_s12  }
 0x1ef   : > { %s944_s21 = scalar_lea.sflag [#allocation3], %s943_s11 }
 0x1f0   : > { %p1214_p6 = pnand %p1217_p5, %p1463_p8 }
 0x1f2   : > { %1345 = dma.done.wait (!%p1214_p6), %s944_s21, 1024  }
 0x1f3   : > { %1347 = vsyncadd (!%p1214_p6), %s944_s21, 4294966272  ;;  %s16_s19 = sadd.s32 1, %s1378_s19   ;;  %s1586_s12 = smov %s1354_s13 }
 0x1f4   : > { %p13_p7 = scmp.ge.s32.totalorder %s16_s19, 12   ;;  %s1587_s13 = smov %s1358_s14 }
 0x1f5   : > { %s1588_s14 = smov %s1472_s30  ;;  %s1589_s15 = smov %s1370_s17 }
 0x1f6   : > { %s1590_s16 = smov %s1374_s18  ;;  %s1591_s17 = smov %s1594_s22 }
 0x1f7   : > { %s1592_s18 = smov %s1598_s23  ;;  %15 = sbr.rel (!%p13_p7) target bundleno = 5 (0x5), region = 79 }
 0x1fe   :  { %949 = vsyncpa [#allocation3], 1 }
 0x1ff   :  { %951 = vsyncpa [#allocation3 + $0x1], 1 }

</bundles_post_ra>
